<compile_context>
chip_gen: v7x
topology: tpu7x:2x2x1
jax: 0.10.0
libtpu: 0.0.40
codegen_flags: <defaults>
</compile_context>

<pallas_src>
import numpy as np
import jax
import jax.numpy as jnp
from jax import lax
from jax.experimental import pallas as pl
from jax.experimental.pallas import tpu as pltpu


# ---------------------------------------------------------------------------
# schedule (cosine_beta_schedule from diffuser.utils)
# ---------------------------------------------------------------------------
def cosine_beta_schedule(timesteps, s=0.008):
    steps = timesteps + 1
    x = np.linspace(0, steps, steps)
    alphas_cumprod = np.cos(((x / steps) + s) / (1 + s) * np.pi * 0.5) ** 2
    alphas_cumprod = alphas_cumprod / alphas_cumprod[0]
    betas = 1.0 - (alphas_cumprod[1:] / alphas_cumprod[:-1])
    return np.clip(betas, 0.0, 0.999)


# ---------------------------------------------------------------------------
# Fused Pallas kernel: all n_timesteps reverse-diffusion steps in one call.
# Grid step s corresponds to timestep i = n_timesteps - 1 - s; the coefficient
# and time-embedding tables are passed already reversed so row s == step s.
# ---------------------------------------------------------------------------
def _fused_p_sample_loop_kernel(coef_ref,      # SMEM (n_t, 3): A, B, C per step
                                temb_ref,      # VMEM (n_t, Dh): b1 + temb, reversed
                                x0_ref,        # VMEM (BH, T): initial randn
                                keep_ref,      # VMEM (BH, T): 1 - conditioning mask
                                condv_ref,     # VMEM (BH, T): conditioning values
                                noise_ref,     # VMEM (BH, T): noise slice for step s
                                w1_ref,        # VMEM (T, Dh)
                                w2_ref,        # VMEM (Dh, T)
                                b2_ref,        # VMEM (1, T)
                                out_ref):      # VMEM (BH, T): carried x (resident)
    s = pl.program_id(0)

    # x = randn(shape); x = apply_conditioning(x, cond)   -- only at the first step
    @pl.when(s == 0)
    def _():
        out_ref[...] = x0_ref[...] * keep_ref[...] + condv_ref[...]

    x = out_ref[...]                                               # (BH, T) f32

    # synthetic denoiser: eps = tanh(x @ W1 + (b1 + temb[t])) @ W2 + b2
    temb = temb_ref[pl.ds(s, 1), :]                                # (1, Dh)
    h = jnp.tanh(
        jnp.dot(x, w1_ref[...], preferred_element_type=jnp.float32) + temb
    )                                                              # (BH, Dh)
    eps = jnp.dot(h, w2_ref[...], preferred_element_type=jnp.float32) + b2_ref[...]

    # folded predict_start_from_noise + q_posterior + default_sample_fn update
    a = coef_ref[s, 0]
    b = coef_ref[s, 1]
    c = coef_ref[s, 2]
    x_new = a * x + b * eps + c * noise_ref[...]

    # x = apply_conditioning(x, cond) after every step (including the last)
    out_ref[...] = x_new * keep_ref[...] + condv_ref[...]


def fused_p_sample_loop(coefs, temb, x0, keep, condv, noises, w1, w2, b2):
    n_t = coefs.shape[0]
    BH, T = x0.shape
    Dh = temb.shape[1]
    return pl.pallas_call(
        _fused_p_sample_loop_kernel,
        out_shape=jax.ShapeDtypeStruct((BH, T), jnp.float32),
        grid=(n_t,),
        in_specs=[
            pl.BlockSpec(memory_space=pltpu.MemorySpace.SMEM),      # coefs (n_t, 3)
            pl.BlockSpec((n_t, Dh), lambda s: (0, 0)),              # temb, resident
            pl.BlockSpec((BH, T), lambda s: (0, 0)),                # x0, resident
            pl.BlockSpec((BH, T), lambda s: (0, 0)),                # keep, resident
            pl.BlockSpec((BH, T), lambda s: (0, 0)),                # condv, resident
            pl.BlockSpec((None, BH, T), lambda s: (s, 0, 0)),       # noise, pipelined
            pl.BlockSpec((T, Dh), lambda s: (0, 0)),                # w1, resident
            pl.BlockSpec((Dh, T), lambda s: (0, 0)),                # w2, resident
            pl.BlockSpec((1, T), lambda s: (0, 0)),                 # b2, resident
        ],
        # constant block index over the (serial) time axis -> x stays VMEM-resident
        out_specs=pl.BlockSpec((BH, T), lambda s: (0, 0)),
        compiler_params=pltpu.CompilerParams(
            dimension_semantics=("arbitrary",)),
    )(coefs, temb, x0, keep, condv, noises, w1, w2, b2)


# ---------------------------------------------------------------------------
# GaussianDiffusion (forward == conditional_sample)
# ---------------------------------------------------------------------------
class GaussianDiffusionPallas:
    def __init__(self, horizon, observation_dim, action_dim,
                 n_timesteps=16, hidden_dim=32, seed=0):
        self.horizon = horizon
        self.observation_dim = observation_dim
        self.action_dim = action_dim
        self.transition_dim = observation_dim + action_dim
        self.n_timesteps = int(n_timesteps)
        self.hidden_dim = hidden_dim
        self.predict_epsilon = True
        self.clip_denoised = False   # matches the reference default

        betas = cosine_beta_schedule(n_timesteps).astype(np.float64)
        alphas = 1.0 - betas
        alphas_cumprod = np.cumprod(alphas)
        alphas_cumprod_prev = np.concatenate([[1.0], alphas_cumprod[:-1]])

        sqrt_recip_ac = np.sqrt(1.0 / alphas_cumprod)
        sqrt_recipm1_ac = np.sqrt(1.0 / alphas_cumprod - 1.0)
        posterior_variance = betas * (1.0 - alphas_cumprod_prev) / (1.0 - alphas_cumprod)
        posterior_log_var = np.log(np.clip(posterior_variance, 1e-20, None))
        coef1 = betas * np.sqrt(alphas_cumprod_prev) / (1.0 - alphas_cumprod)
        coef2 = (1.0 - alphas_cumprod_prev) * np.sqrt(alphas) / (1.0 - alphas_cumprod)
        model_std = np.exp(0.5 * posterior_log_var)
        noise_gate = (np.arange(n_timesteps) != 0).astype(np.float64)

        # Folded per-step coefficients: x_new = A*x + B*eps + C*noise
        A = coef1 * sqrt_recip_ac + coef2
        B = -coef1 * sqrt_recipm1_ac
        C = model_std * noise_gate
        coefs = np.stack([A, B, C], axis=1).astype(np.float32)         # (n_t, 3)
        # row s == timestep (n_t - 1 - s): reverse-time order for the grid
        self.step_coefs = jnp.asarray(np.ascontiguousarray(coefs[::-1]))

        # sinusoidal time embedding for the synthetic denoiser, with b1 folded in
        freqs = np.exp(-np.log(10000.0) * np.arange(hidden_dim) / hidden_dim)
        t = np.arange(n_timesteps).astype(np.float64)
        temb = np.sin(t[:, None] * freqs[None, :])                      # (n_t, Dh)
        b1 = np.zeros((hidden_dim,), np.float64)                        # folded into temb
        temb_b1 = (temb + b1[None, :]).astype(np.float32)
        self.temb = jnp.asarray(np.ascontiguousarray(temb_b1[::-1]))    # (n_t, Dh)

        # deterministic synthetic model parameters (kept f32: v5e has no bf16 VPU)
        key = jax.random.PRNGKey(seed)
        k1, k2 = jax.random.split(key)
        T, Dh = self.transition_dim, hidden_dim
        self.w1 = jax.random.normal(k1, (T, Dh), jnp.float32) / np.sqrt(T)
        self.w2 = jax.random.normal(k2, (Dh, T), jnp.float32) / np.sqrt(Dh)
        self.b2 = jnp.zeros((1, T), jnp.float32)

        self._sample = jax.jit(self._sample_impl)

    # ---- shared preprocessing (initial noise, conditioning mask/values, step noise)
    def _prepare(self, cond, key):
        cond0 = cond[0]
        Bsz = cond0.shape[0]
        H, T = self.horizon, self.transition_dim
        BH = Bsz * H

        kx, kn = jax.random.split(key)
        x0 = jax.random.normal(kx, (Bsz, H, T), jnp.float32)

        # apply_conditioning as keep-mask + values so it runs in-kernel as pure VPU math
        keep = jnp.ones((Bsz, H, T), jnp.float32)
        condv = jnp.zeros((Bsz, H, T), jnp.float32)
        for t_idx, state in cond.items():
            keep = keep.at[:, t_idx, self.action_dim:].set(0.0)
            condv = condv.at[:, t_idx, self.action_dim:].set(state)

        # pre-drawn per-step Gaussian noise; row s is consumed at grid step s
        noises = jax.random.normal(kn, (self.n_timesteps, BH, T), jnp.float32)
        return (x0.reshape(BH, T), keep.reshape(BH, T),
                condv.reshape(BH, T), noises, (Bsz, H, T))

    def _sample_impl(self, cond, key):
        x0, keep, condv, noises, (Bsz, H, T) = self._prepare(cond, key)
        x = fused_p_sample_loop(self.step_coefs, self.temb, x0, keep, condv,
                                noises, self.w1, self.w2, self.b2)
        x = x.reshape(Bsz, H, T)
        # default_sample_fn returns values = zeros(B); sort on equal values is a no-op,
        # so we skip the argsort/gather entirely.
        values = jnp.zeros((Bsz,), jnp.float32)
        return x, values

    def __call__(self, cond, sample_key=None):
        """forward(cond) -> (trajectories (B,H,T), values (B,)) ; chains=None."""
        if sample_key is None:
            sample_key = jax.random.PRNGKey(42)
        return self._sample(cond, sample_key)

    # pure-JAX (non-Pallas) reference of the same fused math, for validation
    def reference_sample(self, cond, sample_key=None):
        if sample_key is None:
            sample_key = jax.random.PRNGKey(42)
        x0, keep, condv, noises, (Bsz, H, T) = self._prepare(cond, sample_key)
        x = x0 * keep + condv
        for s in range(self.n_timesteps):
            temb = self.temb[s][None, :]
            h = jnp.tanh(x @ self.w1 + temb)
            eps = h @ self.w2 + self.b2
            a, b, c = self.step_coefs[s]
            x_new = a * x + b * eps + c * noises[s]
            x = x_new * keep + condv
        return x.reshape(Bsz, H, T), jnp.zeros((Bsz,), jnp.float32)


if __name__ == "__main__":
    B = 2
    horizon = 8
    observation_dim = 8
    action_dim = 4
    n_timesteps = 16

    diffusion = GaussianDiffusionPallas(
        horizon=horizon,
        observation_dim=observation_dim,
        action_dim=action_dim,
        n_timesteps=n_timesteps,
        hidden_dim=32,
        seed=0,
    )

    key = jax.random.PRNGKey(0)
    cond = {0: jax.random.normal(key, (B, observation_dim), jnp.float32)}

    trajectories, values = diffusion(cond)
    trajectories = jax.block_until_ready(trajectories)
    values = jax.block_until_ready(values)

    assert trajectories.shape == (B, horizon, observation_dim + action_dim)
    assert values.shape == (B,)
    assert bool(jnp.all(jnp.isfinite(trajectories)))
    # conditioning must hold exactly on the final sample
    assert bool(jnp.allclose(trajectories[:, 0, action_dim:], cond[0]))

    # cross-check the fused Pallas loop against a plain-JAX reference
    # (loose tolerance: MXU vs XLA f32 matmul rounding over 16 steps)
    ref_traj, _ = diffusion.reference_sample(cond)
    assert bool(jnp.allclose(trajectories, ref_traj, atol=5e-2, rtol=5e-2))

    print("KERNEL_OK")
</pallas_src>

<mosaic_0001>
module attributes {stable_mosaic.version = 11 : i64} {
  func.func @_fused_p_sample_loop_kernel(%arg0: i32, %arg1: memref<16x3xf32, #tpu.memory_space<smem>>, %arg2: memref<16x32xf32, #tpu.memory_space<vmem>>, %arg3: memref<16x12xf32, #tpu.memory_space<vmem>>, %arg4: memref<16x12xf32, #tpu.memory_space<vmem>>, %arg5: memref<16x12xf32, #tpu.memory_space<vmem>>, %arg6: memref<1x16x12xf32, #tpu.memory_space<vmem>>, %arg7: memref<12x32xf32, #tpu.memory_space<vmem>>, %arg8: memref<32x12xf32, #tpu.memory_space<vmem>>, %arg9: memref<1x12xf32, #tpu.memory_space<vmem>>, %arg10: memref<16x12xf32, #tpu.memory_space<vmem>>) attributes {dimension_semantics = [#tpu.dimension_semantics<arbitrary>], iteration_bounds = array<i64: 16>, scalar_prefetch = 0 : i64, scratch_operands = 0 : i64, tpu.core_type = #tpu.core_type<tc>, window_params = [{transform_indices = @transform_0, window_bounds = array<i64: 16, 3>}, {pipeline_mode = #tpu.pipeline_mode<synchronous>, transform_indices = @transform_1, window_bounds = array<i64: 16, 32>}, {pipeline_mode = #tpu.pipeline_mode<synchronous>, transform_indices = @transform_2, window_bounds = array<i64: 16, 12>}, {pipeline_mode = #tpu.pipeline_mode<synchronous>, transform_indices = @transform_3, window_bounds = array<i64: 16, 12>}, {pipeline_mode = #tpu.pipeline_mode<synchronous>, transform_indices = @transform_4, window_bounds = array<i64: 16, 12>}, {transform_indices = @transform_5, window_bounds = array<i64: 1, 16, 12>}, {pipeline_mode = #tpu.pipeline_mode<synchronous>, transform_indices = @transform_6, window_bounds = array<i64: 12, 32>}, {pipeline_mode = #tpu.pipeline_mode<synchronous>, transform_indices = @transform_7, window_bounds = array<i64: 32, 12>}, {pipeline_mode = #tpu.pipeline_mode<synchronous>, transform_indices = @transform_8, window_bounds = array<i64: 1, 12>}, {pipeline_mode = #tpu.pipeline_mode<synchronous>, transform_indices = @transform_9, window_bounds = array<i64: 16, 12>}]} {
    %c0_i32 = arith.constant 0 : i32
    %0 = arith.cmpi eq, %arg0, %c0_i32 : i32
    %1 = arith.extui %0 : i1 to i32
    %c0_i32_0 = arith.constant 0 : i32
    %2 = arith.cmpi ne, %1, %c0_i32_0 : i32
    scf.if %2 {
      %c0_20 = arith.constant 0 : index
      %c0_21 = arith.constant 0 : index
      %37 = vector.load %arg3[%c0_20, %c0_21] : memref<16x12xf32, #tpu.memory_space<vmem>>, vector<16x12xf32>
      %c0_22 = arith.constant 0 : index
      %c0_23 = arith.constant 0 : index
      %38 = vector.load %arg4[%c0_22, %c0_23] : memref<16x12xf32, #tpu.memory_space<vmem>>, vector<16x12xf32>
      %39 = arith.mulf %37, %38 : vector<16x12xf32>
      %c0_24 = arith.constant 0 : index
      %c0_25 = arith.constant 0 : index
      %40 = vector.load %arg5[%c0_24, %c0_25] : memref<16x12xf32, #tpu.memory_space<vmem>>, vector<16x12xf32>
      %41 = arith.addf %39, %40 : vector<16x12xf32>
      %c0_26 = arith.constant 0 : index
      %c0_27 = arith.constant 0 : index
      %42 = vector.load %arg10[%c0_26, %c0_27] : memref<16x12xf32, #tpu.memory_space<vmem>>, vector<16x12xf32>
      tpu.vector_store %arg10[%c0_26, %c0_27], %41 {strides = array<i32>} : memref<16x12xf32, #tpu.memory_space<vmem>>, vector<16x12xf32>,
    } else {
    }
    %c0 = arith.constant 0 : index
    %c0_1 = arith.constant 0 : index
    %3 = vector.load %arg10[%c0, %c0_1] : memref<16x12xf32, #tpu.memory_space<vmem>>, vector<16x12xf32>
    %4 = arith.index_cast %arg0 : i32 to index
    %c0_2 = arith.constant 0 : index
    %5 = vector.load %arg2[%4, %c0_2] : memref<16x32xf32, #tpu.memory_space<vmem>>, vector<1x32xf32>
    %c0_3 = arith.constant 0 : index
    %c0_4 = arith.constant 0 : index
    %6 = vector.load %arg7[%c0_3, %c0_4] : memref<12x32xf32, #tpu.memory_space<vmem>>, vector<12x32xf32>
    %cst = arith.constant dense<0.000000e+00> : vector<16x32xf32>
    %7 = tpu.matmul %3, %6, %cst {dimension_numbers = #tpu.dot_dimension_numbers<[1], [0], [0], [1], [0, 0, 1, 1], [], []>} : vector<16x12xf32>, vector<12x32xf32>, vector<16x32xf32> -> vector<16x32xf32>
    %8 = vector.broadcast %5 : vector<1x32xf32> to vector<16x32xf32>
    %9 = arith.addf %7, %8 : vector<16x32xf32>
    %10 = math.tanh %9 : vector<16x32xf32>
    %c0_5 = arith.constant 0 : index
    %c0_6 = arith.constant 0 : index
    %11 = vector.load %arg8[%c0_5, %c0_6] : memref<32x12xf32, #tpu.memory_space<vmem>>, vector<32x12xf32>
    %cst_7 = arith.constant dense<0.000000e+00> : vector<16x12xf32>
    %12 = tpu.matmul %10, %11, %cst_7 {dimension_numbers = #tpu.dot_dimension_numbers<[1], [0], [0], [1], [0, 0, 1, 1], [], []>} : vector<16x32xf32>, vector<32x12xf32>, vector<16x12xf32> -> vector<16x12xf32>
    %c0_8 = arith.constant 0 : index
    %c0_9 = arith.constant 0 : index
    %13 = vector.load %arg9[%c0_8, %c0_9] : memref<1x12xf32, #tpu.memory_space<vmem>>, vector<1x12xf32>
    %14 = vector.broadcast %13 : vector<1x12xf32> to vector<16x12xf32>
    %15 = arith.addf %12, %14 : vector<16x12xf32>
    %16 = arith.index_cast %arg0 : i32 to index
    %c0_10 = arith.constant 0 : index
    %17 = memref.load %arg1[%16, %c0_10] : memref<16x3xf32, #tpu.memory_space<smem>>
    %18 = arith.index_cast %arg0 : i32 to index
    %c1 = arith.constant 1 : index
    %19 = memref.load %arg1[%18, %c1] : memref<16x3xf32, #tpu.memory_space<smem>>
    %20 = arith.index_cast %arg0 : i32 to index
    %c2 = arith.constant 2 : index
    %21 = memref.load %arg1[%20, %c2] : memref<16x3xf32, #tpu.memory_space<smem>>
    %22 = vector.broadcast %17 : f32 to vector<16x12xf32>
    %23 = arith.mulf %22, %3 : vector<16x12xf32>
    %24 = vector.broadcast %19 : f32 to vector<16x12xf32>
    %25 = arith.mulf %24, %15 : vector<16x12xf32>
    %26 = arith.addf %23, %25 : vector<16x12xf32>
    %c0_11 = arith.constant 0 : index
    %c0_12 = arith.constant 0 : index
    %c0_13 = arith.constant 0 : index
    %27 = vector.load %arg6[%c0_11, %c0_12, %c0_13] : memref<1x16x12xf32, #tpu.memory_space<vmem>>, vector<1x16x12xf32>
    %28 = vector.shape_cast %27 : vector<1x16x12xf32> to vector<16x12xf32>
    %29 = vector.broadcast %21 : f32 to vector<16x12xf32>
    %30 = arith.mulf %29, %28 : vector<16x12xf32>
    %31 = arith.addf %26, %30 : vector<16x12xf32>
    %c0_14 = arith.constant 0 : index
    %c0_15 = arith.constant 0 : index
    %32 = vector.load %arg4[%c0_14, %c0_15] : memref<16x12xf32, #tpu.memory_space<vmem>>, vector<16x12xf32>
    %33 = arith.mulf %31, %32 : vector<16x12xf32>
    %c0_16 = arith.constant 0 : index
    %c0_17 = arith.constant 0 : index
    %34 = vector.load %arg5[%c0_16, %c0_17] : memref<16x12xf32, #tpu.memory_space<vmem>>, vector<16x12xf32>
    %35 = arith.addf %33, %34 : vector<16x12xf32>
    %c0_18 = arith.constant 0 : index
    %c0_19 = arith.constant 0 : index
    %36 = vector.load %arg10[%c0_18, %c0_19] : memref<16x12xf32, #tpu.memory_space<vmem>>, vector<16x12xf32>
    tpu.vector_store %arg10[%c0_18, %c0_19], %35 {strides = array<i32>} : memref<16x12xf32, #tpu.memory_space<vmem>>, vector<16x12xf32>,
    return
  }
  func.func @transform_0(%arg0: i32) -> (i32, i32) {
    %c0_i32 = arith.constant 0 : i32
    %c0_i32_0 = arith.constant 0 : i32
    %c0_i32_1 = arith.constant 0 : i32
    return %c0_i32, %c0_i32_0 : i32, i32
  }
  func.func @transform_1(%arg0: i32) -> (i32, i32) {
    %c0_i32 = arith.constant 0 : i32
    %c0_i32_0 = arith.constant 0 : i32
    %c0_i32_1 = arith.constant 0 : i32
    return %c0_i32, %c0_i32_0 : i32, i32
  }
  func.func @transform_2(%arg0: i32) -> (i32, i32) {
    %c0_i32 = arith.constant 0 : i32
    %c0_i32_0 = arith.constant 0 : i32
    %c0_i32_1 = arith.constant 0 : i32
    return %c0_i32, %c0_i32_0 : i32, i32
  }
  func.func @transform_3(%arg0: i32) -> (i32, i32) {
    %c0_i32 = arith.constant 0 : i32
    %c0_i32_0 = arith.constant 0 : i32
    %c0_i32_1 = arith.constant 0 : i32
    return %c0_i32, %c0_i32_0 : i32, i32
  }
  func.func @transform_4(%arg0: i32) -> (i32, i32) {
    %c0_i32 = arith.constant 0 : i32
    %c0_i32_0 = arith.constant 0 : i32
    %c0_i32_1 = arith.constant 0 : i32
    return %c0_i32, %c0_i32_0 : i32, i32
  }
  func.func @transform_5(%arg0: i32) -> (i32, i32, i32) {
    %c0_i32 = arith.constant 0 : i32
    %c0_i32_0 = arith.constant 0 : i32
    %c0_i32_1 = arith.constant 0 : i32
    return %arg0, %c0_i32, %c0_i32_0 : i32, i32, i32
  }
  func.func @transform_6(%arg0: i32) -> (i32, i32) {
    %c0_i32 = arith.constant 0 : i32
    %c0_i32_0 = arith.constant 0 : i32
    %c0_i32_1 = arith.constant 0 : i32
    return %c0_i32, %c0_i32_0 : i32, i32
  }
  func.func @transform_7(%arg0: i32) -> (i32, i32) {
    %c0_i32 = arith.constant 0 : i32
    %c0_i32_0 = arith.constant 0 : i32
    %c0_i32_1 = arith.constant 0 : i32
    return %c0_i32, %c0_i32_0 : i32, i32
  }
  func.func @transform_8(%arg0: i32) -> (i32, i32) {
    %c0_i32 = arith.constant 0 : i32
    %c0_i32_0 = arith.constant 0 : i32
    %c0_i32_1 = arith.constant 0 : i32
    return %c0_i32, %c0_i32_0 : i32, i32
  }
  func.func @transform_9(%arg0: i32) -> (i32, i32) {
    %c0_i32 = arith.constant 0 : i32
    %c0_i32_0 = arith.constant 0 : i32
    %c0_i32_1 = arith.constant 0 : i32
    return %c0_i32, %c0_i32_0 : i32, i32
  }
}

</mosaic_0001>

<bundles_post_ra>
// kernel: sub.18
= control target key start
LH: loop header
LB: loop body
LE: loop exit
PB: predicated region body
PF: predicated region fallthrough
CT: control target
= control target key end

     0   :  { %s26_s0 = inlined_call_operand.<no memory space> [shape: f32[], index: 0, kind: input, shape index: {}]   ;;  %s27_s1 = inlined_call_operand.vmem [shape: f32[2,8,12], index: 1, kind: output, shape index: {}]  }
   0x1   :  { %v2_v0 = vstv %s26_s0 }
   0x2   :  { %3 = vst [vmem:[%s27_s1] sm:$0xff] %v2_v0  ;;  %6 = vst [vmem:[%s27_s1 + $0x8] sm:$0xff] %v2_v0 }

// kernel: _sample_impl.1
= control target key start
LH: loop header
LB: loop body
LE: loop exit
PB: predicated region body
PF: predicated region fallthrough
CT: control target
= control target key end

     0   :  { %14 = vsyncpa [#allocation4], 0  ;;  %s982_s0 = inlined_call_operand.vmem [shape: f32[16,3], index: 0, kind: input, shape index: {}]   ;;  %s983_s1 = inlined_call_operand.vmem [shape: f32[16,32], index: 1, kind: input, shape index: {}]   ;;  %s984_s2 = inlined_call_operand.vmem [shape: f32[16,12], index: 2, kind: input, shape index: {}]   ;;  %s985_s3 = inlined_call_operand.vmem [shape: f32[16,12], index: 3, kind: input, shape index: {}]   ;;  %s986_s4 = inlined_call_operand.vmem [shape: f32[16,12], index: 4, kind: input, shape index: {}]   ;;  %s987_s5 = inlined_call_operand.vmem [shape: f32[16,16,12], index: 5, kind: input, shape index: {}]   ;;  %s988_s6 = inlined_call_operand.vmem [shape: f32[12,32], index: 6, kind: input, shape index: {}]   ;;  %s989_s7 = inlined_call_operand.vmem [shape: f32[32,12], index: 7, kind: input, shape index: {}]   ;;  %s990_s8 = inlined_call_operand.vmem [shape: f32[1,12], index: 8, kind: input, shape index: {}]   ;;  %s991_s9 = inlined_call_operand.hbm [shape: f32[16,12], index: 9, kind: output, shape index: {}]  }
   0x1   :  { %15 = vsyncpa [#allocation3], 0  ;;  %s848_s30 = smov 0  }
   0x2 LB: > { %s854_s10 = sadd.s32 4294967295, %s789_s30   ;;  %p636_p0 = scmp.ge.s32.totalorder %s789_s30, 1  ;;  %s789_s30 = sphi %s848_s30, %s21_s30  }
   0x3   : > { %p241_p1 = scmp.lt.s32.totalorder %s789_s30, 17  ;;  %p637_p2 = scmp.ne.s32.totalorder %s854_s10, 0 }
   0x4   : > { %s253_s13 = sshll.u32 %s982_s0, 4  ;;  %p711_p4 = scmp.eq.s32.totalorder %s854_s10, 0  ;;  %s254_s13 = int_to_ptr.vmem [resolvable:$true] %s253_s13 }
   0x5   : > { %p862_p3 = pnand %p636_p0, %p241_p1  ;;  %s734_s16 = scalar_lea.vmem %s254_s13, 256 }
   0x6   : > { %p735_p7 = scmp.ne.s32.totalorder %s254_s13, %s734_s16  ;;  %p742_p11 = scmp.lt.s32.totalorder %s254_s13, %s254_s13 }
   0x7   : > { %p707_p5 = pneg %p862_p3  ;;  %p743_p12 = scmp.lt.s32.totalorder %s734_s16, %s734_s16 }
   0x9   : > { %p871_p6 = pnand %p711_p4, %p707_p5  ;;  %p744_p13 = por %p743_p12, %p742_p11 }
   0xb   : > { %p736_p8 = pneg %p871_p6 }
   0xd   : > { %p737_p9 = pnand %p736_p8, %p735_p7 }
   0xf   : > { %p738_p10 = pneg %p737_p9 }
  0x11   : > { %p745_p0 = pnand %p744_p13, %p738_p10 }
  0x13   : > { %748 = shalt.err (!%p745_p0)
}
  0x14   : > { %s791_s17 = smov [#allocation2]   ;;  %s792_s18 = smov 128  }
  0x15   : > { %s793_s19 = smov 8   ;;  %298 = sbr.rel (%p862_p3) target bundleno = 515 (0x203), region = 56 }
  0x16   : > { %710 = dma.vmem_to_smem (!%p871_p6), %s254_s13, 256, %s791_s17, [#allocation4], %s792_s18, %s792_s18, %s793_s19  }
  0x1c   : > { %780 = dma.done.wait (%p711_p4), [#allocation4], 256  }
  0x1d   : > { %782 = vsyncadd (%p711_p4), [#allocation4], 4294967040 }
  0x1e   : > { %304 = sfence }
  0x1f   : > { %p330_p1 = scmp.lt.s32.totalorder %s854_s10, 15  ;;  %338 = sbr.rel (%p637_p2) target bundleno = 39 (0x27), region = 64  ;;  %v339_v0 = vld [vmem:[%s984_s2] sm:$0xff] (!%p637_p2)  ;;  %v340_v4 = vld [vmem:[%s984_s2 + $0x8] sm:$0xff] (!%p637_p2)  ;;  %vm349_vm0 = vcmask (!%p637_p2), 97280  }
  0x20   : > { %v341_v1 = vld [vmem:[%s985_s3] sm:$0xff] (!%p637_p2)  ;;  %v342_v5 = vld [vmem:[%s985_s3 + $0x8] sm:$0xff] (!%p637_p2) }
  0x21   : > { %s331_s20 = scalar_select %p330_p1, %s854_s10, 15 }
  0x22   : > { %v345_v2 = vld [vmem:[%s986_s4] sm:$0xff] (!%p637_p2)  ;;  %v343_v3 = vmul.f32 (!%p637_p2), %v341_v1, %v339_v0  ;;  %v346_v6 = vld [vmem:[%s986_s4 + $0x8] sm:$0xff] (!%p637_p2)  ;;  %v344_v7 = vmul.f32 (!%p637_p2), %v342_v5, %v340_v4 }
  0x23   : > { %s656_s21 = sshll.u32 %s331_s20, 4 }
  0x24   : > { %s890_s24 = scalar_lea.vmem %s987_s5, %s656_s21  ;;  %v347_v8 = vadd.f32 (!%p637_p2), %v345_v2, %v343_v3  ;;  %v348_v9 = vadd.f32 (!%p637_p2), %v346_v6, %v344_v7 }
  0x26   : > { %350 = vst.msk [vmem:[#allocation5] sm:$0xff] %vm349_vm0, %v347_v8  ;;  %351 = vst.msk [vmem:[#allocation5 + $0x8] sm:$0xff] %vm349_vm0, %v348_v9 }
  0x27 PF: > { %v356_v10 = vld [vmem:[%s988_s6] sm:$0xff]  ;;  %v357_v11 = vld [vmem:[%s988_s6 + $0x8] sm:$0xf]  ;;  %vm369_vm1 = vcmask 1043456   ;;  %vm794_vm2 = vmmov 1   ;;  %vm362_vm4 = vcmask 97280   ;;  %s354_s14 = scalar_lea.vmem %s983_s1, %s854_s10 }
  0x28   : > { %v685_v13 = vpack.c.bf16 %v357_v11, %v356_v10  ;;  %vm686_vm3 = vmpackc.low %vm369_vm1, %vm794_vm2  ;;  %v450_v15 = vld [vmem:[%s989_s7] sm:$0xff]  ;;  %v451_v16 = vld [vmem:[%s989_s7 + $0x8] sm:$0xff]  ;;  %vm461_vm5 = vcmask 261120   ;;  %s651_s15 = sshll.u32 %s854_s10, 7  ;;  %s795_s29 = smov [#allocation5]  }
  0x29   : > { %v452_v17 = vld [vmem:[%s989_s7 + $0x10] sm:$0xff]  ;;  %v691_v18 = vpack.c.bf16 %v451_v16, %v450_v15  ;;  %v453_v19 = vld [vmem:[%s989_s7 + $0x18] sm:$0xff]  ;;  %v644_v21 = vld [vmem:[%s354_s14] ss:$0 sm:$0xff]  ;;  %s547_s16 = sadd.s32 2, %s651_s15  ;;  %s545_s17 = sadd.s32 1, %s651_s15 }
  0x2a   : > { %687 = vmatprep.subr.msk.bf16.mxu0 %vm686_vm3, %v685_v13  ;;  %v695_v20 = vpack.c.bf16 %v453_v19, %v452_v17  ;;  %s544_s18 = sld [smem:[#allocation2 + %s651_s15]]  ;;  %v648_v29 = vld [vmem:[%s990_s8] ss:$0 sm:$0xff]  ;;  %v558_v32 = vld [vmem:[%s890_s24 + $0x8] sm:$0xff]  ;;  %s580_s11 = sshll.u32 %s795_s29, 4  ;;  %s581_s11 = int_to_ptr.vmem [resolvable:$true] %s580_s11 }
  0x2b   : > { %690 = vmatpush3.bf16.msk.msra.mxu0 %vm686_vm3, %v685_v13  ;;  %692 = vmatprep.subr.bf16.mxu1 %v691_v18  ;;  %s546_s19 = sld [smem:[#allocation2 + %s545_s17]]  ;;  %v557_v37 = vld [vmem:[%s890_s24] sm:$0xff]  ;;  %v565_v45 = vld [vmem:[%s985_s3 + $0x8] sm:$0xff]  ;;  %p713_p2 = scmp.eq.s32.totalorder %s854_s10, 15 }
  0x2c   : > { %694 = vmatpush3.bf16.msra.mxu1 %v691_v18  ;;  %s548_s20 = sld [smem:[#allocation2 + %s547_s16]]  ;;  %v564_v48 = vld [vmem:[%s985_s3] sm:$0xff]  ;;  %v569_v49 = vld [vmem:[%s986_s4 + $0x8] sm:$0xff]  ;;  %s749_s14 = scalar_lea.vmem %s581_s11, 256 }
  0x2d   : > { %v352_v12 = vld [vmem:[#allocation5] sm:$0xff]  ;;  %v353_v14 = vld [vmem:[#allocation5 + $0x8] sm:$0xff]  ;;  %696 = vmatprep.subr.bf16.mxu1 %v695_v20  ;;  %p750_p3 = scmp.ne.s32.totalorder %s581_s11, %s749_s14  ;;  %p756_p6 = scmp.lt.s32.totalorder %s581_s11, %s581_s11 }
  0x2e   : > { %671 = vmatprep.mubr.msk.f32.mxu0 %vm362_vm4, %v352_v12  ;;  %v568_v52 = vld [vmem:[%s986_s4] sm:$0xff]  ;;  %p757_p7 = scmp.lt.s32.totalorder %s749_s14, %s749_s14 }
  0x2f   : > { %672 = vmatmul.mubr.msk.f32.vlgmr.msra.gmra.mrb[0].mxu0 %vm362_vm4, %v353_v14  ;;  %p751_p4 = pnand %p750_p3, %p713_p2 }
  0x30   : > { %698 = vmatpush3.bf16.msra.mxu1 %v695_v20  ;;  %v549_v28 = vstv %s544_s18  ;;  %p758_p8 = por %p757_p7, %p756_p6 }
  0x31   : > { %v552_v31 = vstv %s546_s19  ;;  %v551_v34 = vmul.f32 %v549_v28, %v353_v14  ;;  %v550_v38 = vmul.f32 %v549_v28, %v352_v12  ;;  %p752_p5 = pneg %p751_p4 }
  0x32   : > { %v559_v33 = vstv %s548_s20 }
  0x33   : > { %v561_v41 = vmul.f32 %v559_v33, %v558_v32  ;;  %v560_v43 = vmul.f32 %v559_v33, %v557_v37  ;;  %p759_p9 = pnand %p758_p8, %p752_p5 }
 0x102   : > { %v673_v22 = vpop.f32.mrb[0].mxu0 }
 0x103   : > { %v445_v23 = vadd.f32 %v673_v22, %v644_v21  ;;  %v439_v24 = vpop.f32.mrb[1].mxu0 }
 0x104   : > { %v440_v25 = vadd.f32 %v644_v21, %v439_v24 }
 0x106   : > { %730 = vtanh.f32 %v440_v25 }
 0x107   : > { %732 = vtanh.f32 %v445_v23 }
 0x110   : > { %v731_v26 = vpop.eup %730 }
 0x111   : > { %v733_v27 = vpop.eup %732  ;;  %682 = vmatprep.mubr.msk.f32.mxu1 %vm461_vm5, %v731_v26 }
 0x112   : > { %683 = vmatmul.mubr.msk.f32.vlgmr.msra.gmra.mrb[0].mxu1 %vm461_vm5, %v733_v27 }
 0x1e5   : > { %v684_v30 = vpop.f32.mrb[0].mxu1 }
 0x1e6   : > { %v540_v35 = vadd.f32 %v684_v30, %v648_v29  ;;  %v534_v36 = vpop.f32.mrb[1].mxu1 }
 0x1e7   : > { %v535_v39 = vadd.f32 %v648_v29, %v534_v36 }
 0x1e8   : > { %v554_v40 = vmul.f32 %v552_v31, %v540_v35 }
 0x1e9   : > { %v553_v42 = vmul.f32 %v552_v31, %v535_v39 }
 0x1ea   : > { %v556_v44 = vadd.f32 %v554_v40, %v551_v34 }
 0x1eb   : > { %v555_v46 = vadd.f32 %v553_v42, %v550_v38 }
 0x1ec   : > { %v563_v47 = vadd.f32 %v561_v41, %v556_v44 }
 0x1ed   : > { %v562_v50 = vadd.f32 %v560_v43, %v555_v46 }
 0x1ee   : > { %v567_v51 = vmul.f32 %v565_v45, %v563_v47 }
 0x1ef   : > { %v566_v53 = vmul.f32 %v564_v48, %v562_v50 }
 0x1f0   : > { %v571_v54 = vadd.f32 %v569_v49, %v567_v51 }
 0x1f1   : > { %v570_v55 = vadd.f32 %v568_v52, %v566_v53 }
 0x1f2   : > { %573 = vst.msk [vmem:[#allocation5 + $0x8] sm:$0xff] %vm362_vm4, %v571_v54 }
 0x1f3   : > { %572 = vst.msk [vmem:[#allocation5] sm:$0xff] %vm362_vm4, %v570_v55 }
 0x1f4   : > { %762 = shalt.err (!%p759_p9)
}
 0x1f5   : > { %s763_s17 = scalar_lea.hbm %s991_s9, 256 }
 0x1f6   : > { %p764_p10 = scmp.ne.s32.totalorder %s991_s9, %s763_s17  ;;  %p769_p13 = scmp.lt.u32.totalorder %s763_s17, %s991_s9 }
 0x1f8   : > { %p765_p11 = pnand %p764_p10, %p713_p2 }
 0x1fa   : > { %p766_p12 = pneg %p765_p11 }
 0x1fc   : > { %p771_p0 = pnand %p769_p13, %p766_p12 }
 0x1fe   : > { %774 = shalt.err (!%p771_p0)
}
 0x1ff   : > { %s796_s22 = smov 128   ;;  %s797_s23 = smov 8  }
 0x200   : > { %704 = dma.vmem_to_hbm [thread:$0]  (%p713_p2), %s581_s11, 256, %s991_s9, [#allocation3], %s796_s22, %s796_s22, %s797_s23  }
 0x201   : > { %784 = dma.done.wait (%p713_p2), [#allocation3], 256  }
 0x202   : > { %786 = vsyncadd (%p713_p2), [#allocation3], 4294967040 }
 0x203 PF: > { %s21_s30 = sadd.s32 1, %s789_s30  }
 0x204   : > { %p18_p1 = scmp.ge.s32.totalorder %s21_s30, 18  }
 0x206   :  { %20 = sbr.rel (!%p18_p1) target bundleno = 2 (0x2), region = 93 }
 0x20d   :  { %596 = vsyncpa [#allocation3], 1 }
 0x20e   :  { %598 = vsyncpa [#allocation3 + $0x1], 1 }
 0x20f   :  { %599 = vsyncpa [#allocation4], 1 }
 0x210   :  { %601 = vsyncpa [#allocation4 + $0x1], 1 }

</bundles_post_ra>
